<compile_context>
chip_gen: v7x
topology: tpu7x:2x2x1
jax: 0.10.0
libtpu: 0.0.40
codegen_flags: <defaults>
</compile_context>

<pallas_src>
import functools
import math

import jax
import jax.numpy as jnp
from jax.experimental import pallas as pl
from jax.experimental.pallas import tpu as pltpu


# ---------------------------------------------------------------------------
# Pass 1: pooled -> fc1 -> relu -> fc2 -> sigmoid  (produces (N, C) gate)
# ---------------------------------------------------------------------------
def se_gate_kernel(x_ref, w1_ref, w2_ref, gate_ref, acc_ref, *, inv_hw):
    t = pl.program_id(0)

    @pl.when(t == 0)
    def _init():
        acc_ref[...] = jnp.zeros_like(acc_ref)

    # Partial spatial sum for this tile, accumulated in f32.
    x = x_ref[...]                                               # (N, C, tHW)
    acc_ref[...] += jnp.sum(x.astype(jnp.float32), axis=-1)      # (N, C)

    @pl.when(t == pl.num_programs(0) - 1)
    def _finalize():
        pooled = acc_ref[...] * inv_hw                           # (N, C) f32
        h = jnp.dot(pooled, w1_ref[...].astype(jnp.float32),
                    preferred_element_type=jnp.float32)          # (N, Cr)
        h = jnp.maximum(h, 0.0)
        s = jnp.dot(h, w2_ref[...].astype(jnp.float32),
                    preferred_element_type=jnp.float32)          # (N, C)
        gate_ref[...] = jax.nn.sigmoid(s).astype(gate_ref.dtype)


# ---------------------------------------------------------------------------
# Pass 2: out = x * gate  (streaming, elementwise, lane-dense)
# ---------------------------------------------------------------------------
def se_scale_kernel(x_ref, gate_ref, o_ref, *, nb):
    n0 = pl.program_id(0) * nb
    g = gate_ref[pl.ds(n0, nb), :]                               # (nb, C) f32
    x = x_ref[...].astype(jnp.float32)                           # (nb, C, tHW)
    o_ref[...] = (x * g[:, :, None]).astype(o_ref.dtype)


# ---------------------------------------------------------------------------
# Tiling helpers
# ---------------------------------------------------------------------------
def _round_up(x, m):
    return (x + m - 1) // m * m


def _pick_hw_tile(hw_pad, rows, itemsize, budget_bytes):
    """Largest multiple-of-128 divisor of hw_pad with rows*tile*itemsize <= budget."""
    if rows * hw_pad * itemsize <= budget_bytes:
        return hw_pad
    t = max(128, (budget_bytes // (rows * itemsize)) // 128 * 128)
    while hw_pad % t != 0:
        t -= 128
    return t


def _pick_batch_tile(n, c, thw, itemsize, budget_bytes, n_hw_tiles):
    """Largest divisor of n that fits the block budget while keeping >= 2 grid steps."""
    divisors = sorted((d for d in range(1, n + 1) if n % d == 0), reverse=True)
    for nb in divisors:
        if nb * c * thw * itemsize > budget_bytes:
            continue
        if (n // nb) * n_hw_tiles >= 2:
            return nb
    for nb in divisors:
        if nb * c * thw * itemsize <= budget_bytes:
            return nb
    return 1


# ---------------------------------------------------------------------------
# Wrapper
# ---------------------------------------------------------------------------
def se_module(x, w1, w2):
    """x: (N, C, H, W); w1: (C, C//r); w2: (C//r, C)."""
    N, C, H, W = x.shape
    HW = H * W
    Cr = w1.shape[1]
    itemsize = jnp.dtype(x.dtype).itemsize

    # Lane-dense spatial axis: pad H*W up to a multiple of 128 (zeros do not
    # perturb the sum-based pool; padded outputs are sliced off at the end).
    HW_pad = _round_up(HW, 128)
    x_flat = x.reshape(N, C, HW)
    if HW_pad != HW:
        x_flat = jnp.pad(x_flat, ((0, 0), (0, 0), (0, HW_pad - HW)))

    VMEM_LIMIT = 32 * 1024 * 1024        # explicit (v5e default is only 16 MiB)
    BLOCK_BUDGET = 1 << 20               # ~1 MiB per streaming x block

    # ---------------- pass 1: (N, C) gate ----------------
    thw_pool = _pick_hw_tile(HW_pad, N * C, itemsize, 2 * BLOCK_BUDGET)
    n_pool_tiles = HW_pad // thw_pool

    gate = pl.pallas_call(
        functools.partial(se_gate_kernel, inv_hw=1.0 / HW),
        out_shape=jax.ShapeDtypeStruct((N, C), jnp.float32),
        grid_spec=pltpu.PrefetchScalarGridSpec(
            num_scalar_prefetch=0,
            grid=(n_pool_tiles,),
            in_specs=[
                pl.BlockSpec((N, C, thw_pool), lambda t: (0, 0, t)),
                pl.BlockSpec((C, Cr), lambda t: (0, 0)),
                pl.BlockSpec((Cr, C), lambda t: (0, 0)),
            ],
            out_specs=pl.BlockSpec((N, C), lambda t: (0, 0)),
            scratch_shapes=[pltpu.VMEM((N, C), jnp.float32)],
        ),
        compiler_params=pltpu.CompilerParams(
            dimension_semantics=("arbitrary",),
            vmem_limit_bytes=VMEM_LIMIT),
    )(x_flat, w1, w2)

    # ---------------- pass 2: out = x * gate ----------------
    thw = _pick_hw_tile(HW_pad, C, itemsize, BLOCK_BUDGET)
    n_hw_tiles = HW_pad // thw
    nb = _pick_batch_tile(N, C, thw, itemsize, BLOCK_BUDGET, n_hw_tiles)

    out_flat = pl.pallas_call(
        functools.partial(se_scale_kernel, nb=nb),
        out_shape=jax.ShapeDtypeStruct((N, C, HW_pad), x.dtype),
        grid_spec=pltpu.PrefetchScalarGridSpec(
            num_scalar_prefetch=0,
            grid=(N // nb, n_hw_tiles),
            in_specs=[
                pl.BlockSpec((nb, C, thw), lambda n, h: (n, 0, h)),
                pl.BlockSpec((N, C), lambda n, h: (0, 0)),   # gate stays resident
            ],
            out_specs=pl.BlockSpec((nb, C, thw), lambda n, h: (n, 0, h)),
        ),
        compiler_params=pltpu.CompilerParams(
            dimension_semantics=("parallel", "parallel"),
            vmem_limit_bytes=VMEM_LIMIT),
    )(x_flat, gate)

    return out_flat[:, :, :HW].reshape(N, C, H, W)


def se_ref(x, w1, w2):
    """Pure-JAX reference matching the PyTorch forward."""
    pooled = jnp.mean(x, axis=(2, 3))                     # (N, C)
    h = jnp.maximum(pooled @ w1, 0.0)                     # (N, Cr)
    s = jax.nn.sigmoid(h @ w2)                            # (N, C)
    return x * s[:, :, None, None]


if __name__ == "__main__":
    # Small shapes consistent with the module: channels=32, reduction=4.
    N, C, H, W = 2, 32, 16, 16
    reduction = 4
    Cr = C // reduction

    key = jax.random.PRNGKey(0)
    kx, k1, k2 = jax.random.split(key, 3)

    x = jax.random.normal(kx, (N, C, H, W), dtype=jnp.float32)

    # fc1: xavier_uniform over PyTorch weight (Cr, C, 1, 1): fan_in=C, fan_out=Cr.
    a1 = math.sqrt(6.0 / (C + Cr))
    w1_torch = jax.random.uniform(k1, (Cr, C), jnp.float32, -a1, a1)
    w1 = w1_torch.T                                       # (C, Cr) for pooled @ w1

    # fc2: PyTorch Conv2d default (kaiming_uniform, a=sqrt(5)) -> bound 1/sqrt(fan_in).
    a2 = 1.0 / math.sqrt(Cr)
    w2_torch = jax.random.uniform(k2, (C, Cr), jnp.float32, -a2, a2)
    w2 = w2_torch.T                                       # (Cr, C) for h @ w2

    out = se_module(x, w1, w2)
    jax.block_until_ready(out)

    ref = se_ref(x, w1, w2)
    assert out.shape == (N, C, H, W)
    assert jnp.allclose(out, ref, atol=1e-5, rtol=1e-5), "mismatch vs reference"

    print("KERNEL_OK")
</pallas_src>

<mosaic_0001>
module attributes {stable_mosaic.version = 11 : i64} {
  func.func @se_gate_kernel(%arg0: i32, %arg1: memref<2x32x256xf32, #tpu.memory_space<vmem>>, %arg2: memref<32x8xf32, #tpu.memory_space<vmem>>, %arg3: memref<8x32xf32, #tpu.memory_space<vmem>>, %arg4: memref<2x32xf32, #tpu.memory_space<vmem>>, %arg5: memref<2x32xf32, #tpu.memory_space<vmem>>) attributes {dimension_semantics = [#tpu.dimension_semantics<arbitrary>], iteration_bounds = array<i64: 1>, scalar_prefetch = 0 : i64, scratch_operands = 1 : i64, tpu.core_type = #tpu.core_type<tc>, window_params = [{transform_indices = @transform_0, window_bounds = array<i64: 2, 32, 256>}, {pipeline_mode = #tpu.pipeline_mode<synchronous>, transform_indices = @transform_1, window_bounds = array<i64: 32, 8>}, {pipeline_mode = #tpu.pipeline_mode<synchronous>, transform_indices = @transform_2, window_bounds = array<i64: 8, 32>}, {pipeline_mode = #tpu.pipeline_mode<synchronous>, transform_indices = @transform_3, window_bounds = array<i64: 2, 32>}]} {
    %c0_i32 = arith.constant 0 : i32
    %0 = arith.cmpi eq, %arg0, %c0_i32 : i32
    %1 = arith.extui %0 : i1 to i32
    %c0_i32_0 = arith.constant 0 : i32
    %2 = arith.cmpi ne, %1, %c0_i32_0 : i32
    scf.if %2 {
      %cst_9 = arith.constant 0.000000e+00 : f32
      %11 = vector.broadcast %cst_9 : f32 to vector<2x32xf32>
      %c0_10 = arith.constant 0 : index
      %c0_11 = arith.constant 0 : index
      %12 = vector.load %arg5[%c0_10, %c0_11] : memref<2x32xf32, #tpu.memory_space<vmem>>, vector<2x32xf32>
      tpu.vector_store %arg5[%c0_10, %c0_11], %11 {strides = array<i32>} : memref<2x32xf32, #tpu.memory_space<vmem>>, vector<2x32xf32>,
    } else {
    }
    %c0 = arith.constant 0 : index
    %c0_1 = arith.constant 0 : index
    %c0_2 = arith.constant 0 : index
    %3 = vector.load %arg1[%c0, %c0_1, %c0_2] : memref<2x32x256xf32, #tpu.memory_space<vmem>>, vector<2x32x256xf32>
    %c0_3 = arith.constant 0 : index
    %c0_4 = arith.constant 0 : index
    %4 = vector.load %arg5[%c0_3, %c0_4] : memref<2x32xf32, #tpu.memory_space<vmem>>, vector<2x32xf32>
    %cst = arith.constant dense<0.000000e+00> : vector<2x32xf32>
    %5 = vector.multi_reduction <add>, %3, %cst [2] : vector<2x32x256xf32> to vector<2x32xf32>
    %6 = arith.addf %4, %5 : vector<2x32xf32>
    %c0_5 = arith.constant 0 : index
    %c0_6 = arith.constant 0 : index
    %7 = vector.load %arg5[%c0_5, %c0_6] : memref<2x32xf32, #tpu.memory_space<vmem>>, vector<2x32xf32>
    tpu.vector_store %arg5[%c0_5, %c0_6], %6 {strides = array<i32>} : memref<2x32xf32, #tpu.memory_space<vmem>>, vector<2x32xf32>,
    %c0_i32_7 = arith.constant 0 : i32
    %8 = arith.cmpi eq, %arg0, %c0_i32_7 : i32
    %9 = arith.extui %8 : i1 to i32
    %c0_i32_8 = arith.constant 0 : i32
    %10 = arith.cmpi ne, %9, %c0_i32_8 : i32
    scf.if %10 {
      %c0_9 = arith.constant 0 : index
      %c0_10 = arith.constant 0 : index
      %11 = vector.load %arg5[%c0_9, %c0_10] : memref<2x32xf32, #tpu.memory_space<vmem>>, vector<2x32xf32>
      %cst_11 = arith.constant 3.906250e-03 : f32
      %12 = vector.broadcast %cst_11 : f32 to vector<2x32xf32>
      %13 = arith.mulf %11, %12 : vector<2x32xf32>
      %c0_12 = arith.constant 0 : index
      %c0_13 = arith.constant 0 : index
      %14 = vector.load %arg2[%c0_12, %c0_13] : memref<32x8xf32, #tpu.memory_space<vmem>>, vector<32x8xf32>
      %cst_14 = arith.constant dense<0.000000e+00> : vector<2x8xf32>
      %15 = tpu.matmul %13, %14, %cst_14 {dimension_numbers = #tpu.dot_dimension_numbers<[1], [0], [0], [1], [0, 0, 1, 1], [], []>} : vector<2x32xf32>, vector<32x8xf32>, vector<2x8xf32> -> vector<2x8xf32>
      %cst_15 = arith.constant 0.000000e+00 : f32
      %16 = vector.broadcast %cst_15 : f32 to vector<2x8xf32>
      %17 = arith.maximumf %15, %16 : vector<2x8xf32>
      %c0_16 = arith.constant 0 : index
      %c0_17 = arith.constant 0 : index
      %18 = vector.load %arg3[%c0_16, %c0_17] : memref<8x32xf32, #tpu.memory_space<vmem>>, vector<8x32xf32>
      %cst_18 = arith.constant dense<0.000000e+00> : vector<2x32xf32>
      %19 = tpu.matmul %17, %18, %cst_18 {dimension_numbers = #tpu.dot_dimension_numbers<[1], [0], [0], [1], [0, 0, 1, 1], [], []>} : vector<2x8xf32>, vector<8x32xf32>, vector<2x32xf32> -> vector<2x32xf32>
      %20 = arith.negf %19 : vector<2x32xf32>
      %21 = math.exp %20 : vector<2x32xf32>
      %cst_19 = arith.constant 1.000000e+00 : f32
      %22 = vector.broadcast %cst_19 : f32 to vector<2x32xf32>
      %23 = arith.addf %22, %21 : vector<2x32xf32>
      %24 = arith.divf %22, %23 : vector<2x32xf32>
      %c0_20 = arith.constant 0 : index
      %c0_21 = arith.constant 0 : index
      %25 = vector.load %arg4[%c0_20, %c0_21] : memref<2x32xf32, #tpu.memory_space<vmem>>, vector<2x32xf32>
      tpu.vector_store %arg4[%c0_20, %c0_21], %24 {strides = array<i32>} : memref<2x32xf32, #tpu.memory_space<vmem>>, vector<2x32xf32>,
    } else {
    }
    return
  }
  func.func @transform_0(%arg0: i32) -> (i32, i32, i32) {
    %c0_i32 = arith.constant 0 : i32
    %c0_i32_0 = arith.constant 0 : i32
    %c0_i32_1 = arith.constant 0 : i32
    return %c0_i32, %c0_i32_0, %arg0 : i32, i32, i32
  }
  func.func @transform_1(%arg0: i32) -> (i32, i32) {
    %c0_i32 = arith.constant 0 : i32
    %c0_i32_0 = arith.constant 0 : i32
    %c0_i32_1 = arith.constant 0 : i32
    return %c0_i32, %c0_i32_0 : i32, i32
  }
  func.func @transform_2(%arg0: i32) -> (i32, i32) {
    %c0_i32 = arith.constant 0 : i32
    %c0_i32_0 = arith.constant 0 : i32
    %c0_i32_1 = arith.constant 0 : i32
    return %c0_i32, %c0_i32_0 : i32, i32
  }
  func.func @transform_3(%arg0: i32) -> (i32, i32) {
    %c0_i32 = arith.constant 0 : i32
    %c0_i32_0 = arith.constant 0 : i32
    %c0_i32_1 = arith.constant 0 : i32
    return %c0_i32, %c0_i32_0 : i32, i32
  }
}

</mosaic_0001>

<bundles_post_ra>
// kernel: tpu_custom_call.1
= control target key start
LH: loop header
LB: loop body
LE: loop exit
PB: predicated region body
PF: predicated region fallthrough
CT: control target
= control target key end

     0   :  { %8 = vsyncpa [#allocation4], 0  ;;  %s477_s0 = inlined_call_operand.hbm [shape: f32[2,32,256], index: 0, kind: input, shape index: {}]   ;;  %s478_s1 = inlined_call_operand.vmem [shape: f32[32,8], index: 1, kind: input, shape index: {}]   ;;  %s479_s2 = inlined_call_operand.vmem [shape: f32[8,32], index: 2, kind: input, shape index: {}]   ;;  %s480_s3 = inlined_call_operand.hbm [shape: f32[2,32], index: 3, kind: output, shape index: {}]  }
   0x1   :  { %9 = vsyncpa [#allocation5], 0  ;;  %s408_s12 = smov [#allocation3]   ;;  %s360_s16 = scalar_lea.hbm %s477_s0, 2048 }
   0x2   :  { %s15_s13 = sshll.u32 %s408_s12, 4  ;;  %p361_p0 = scmp.ne.s32.totalorder %s477_s0, %s360_s16  ;;  %s16_s13 = int_to_ptr.vmem [resolvable:$true] %s15_s13 }
   0x3   :  { %p364_p1 = scmp.lt.u32.totalorder %s360_s16, %s477_s0 }
   0x5   :  { %p366_p2 = pnand %p364_p1, %p361_p0 }
   0x7   :  { %369 = shalt.err (!%p366_p2)
}
   0x8   :  { %s370_s21 = scalar_lea.vmem %s16_s13, 2048  ;;  %p375_p4 = scmp.lt.s32.totalorder %s16_s13, %s16_s13 }
   0x9   :  { %p371_p3 = scmp.ne.s32.totalorder %s16_s13, %s370_s21  ;;  %p376_p5 = scmp.lt.s32.totalorder %s370_s21, %s370_s21 }
   0xb   :  { %p377_p6 = por %p376_p5, %p375_p4 }
   0xd   :  { %p378_p7 = pnand %p377_p6, %p371_p3 }
   0xf   :  { %381 = shalt.err (!%p378_p7)
}
  0x10   :  { %s409_s22 = smov 256   ;;  %s410_s23 = smov 16  }
  0x11   :  { %21 = dma.hbm_to_vmem [thread:$0]  %s477_s0, 2048, %s16_s13, [#allocation4], %s409_s22, %s409_s22, %s410_s23  }
  0x12   :  { %404 = dma.done.wait [#allocation4], 2048  }
  0x13   :  { %405 = vsyncadd [#allocation4], 4294965248  ;;  %v43_v0 = vld [vmem:[#allocation3 + $0x40] sm:$0xff]  ;;  %v44_v1 = vld [vmem:[#allocation3 + $0x48] sm:$0xff]  ;;  %vm33_vm0 = vcmask 254976   ;;  %v411_v24 = vmov 0.0   ;;  %v84_v32 = vlaneseq }
  0x14   :  { %v35_v2 = vld [vmem:[#allocation3] sm:$0xff]  ;;  %v64_v3 = vadd.f32 %v44_v1, %v43_v0  ;;  %v36_v4 = vld [vmem:[#allocation3 + $0x8] sm:$0xff]  ;;  %v45_v5 = vld [vmem:[#allocation3 + $0x50] sm:$0xff]  ;;  %34 = vst.msk [vmem:[#allocation2] sm:$0x3] %vm33_vm0, %v411_v24  ;;  %338 = vmatprep.subr.mxu1 %v411_v24  ;;  %v412_v28 = vmov 0.0|0.0  }
  0x15   :  { %v46_v6 = vld [vmem:[#allocation3 + $0x58] sm:$0xff]  ;;  %v52_v7 = vadd.f32 %v36_v4, %v35_v2  ;;  %v37_v8 = vld [vmem:[#allocation3 + $0x10] sm:$0xff]  ;;  %v47_v12 = vld [vmem:[#allocation3 + $0x60] sm:$0xff]  ;;  %343 = vmatprep.subr.bf16.mxu0 %v412_v28  ;;  %vm413_vm1 = vmmov 0   ;;  %v85_v33 = vand.u32 127, %v84_v32  ;;  %v87_v38 = vshrl.u32 %v84_v32, 7 }
  0x16   :  { %v38_v9 = vld [vmem:[#allocation3 + $0x18] sm:$0xff]  ;;  %65 = vadd.xlane.f32.xlu1 %v64_v3  ;;  %v67_v10 = vadd.f32 %v46_v6, %v45_v5  ;;  %v48_v13 = vld [vmem:[#allocation3 + $0x68] sm:$0xff]  ;;  %v39_v14 = vld [vmem:[#allocation3 + $0x20] sm:$0xff]  ;;  %335 = vmatprep.mubr.msk.f32.mxu0 %vm413_vm1, %v411_v24  ;;  %vm95_vm2 = vcmask 130112   ;;  %vm102_vm3 = vcmask 195712   ;;  %vm109_vm4 = vcmask 261312  }
  0x17   :  { %53 = vadd.xlane.f32.xlu0 %v52_v7  ;;  %v55_v11 = vadd.f32 %v38_v9, %v37_v8  ;;  %v40_v15 = vld [vmem:[#allocation3 + $0x28] sm:$0xff]  ;;  %v70_v16 = vadd.f32 %v48_v13, %v47_v12  ;;  %v49_v18 = vld [vmem:[#allocation3 + $0x70] sm:$0xff]  ;;  %v50_v19 = vld [vmem:[#allocation3 + $0x78] sm:$0xff]  ;;  %340 = vmatprep.mubr.msk.f32.mxu1 %vm413_vm1, %v411_v24  ;;  %v90_v36 = vadd.s32 4294967288, %v85_v33  ;;  %v97_v37 = vadd.s32 4294967280, %v85_v33  ;;  %s414_s7 = smov [#allocation6]  }
  0x18   :  { %v58_v17 = vadd.f32 %v40_v15, %v39_v14  ;;  %v41_v20 = vld [vmem:[#allocation3 + $0x30] sm:$0xff]  ;;  %v42_v21 = vld [vmem:[#allocation3 + $0x38] sm:$0xff]  ;;  %v73_v22 = vadd.f32 %v50_v19, %v49_v18  ;;  %v142_v26 = vld [vmem:[%s478_s1 + $0x8] sm:$0xff]  ;;  %v104_v42 = vadd.s32 4294967272, %v85_v33  ;;  %v88_v44 = vsub.s32 %v85_v33, %v87_v38  ;;  %s308_s8 = sshll.u32 %s414_s7, 4  ;;  %s309_s8 = int_to_ptr.vmem [resolvable:$true] %s308_s8 }
  0x19   :  { %v61_v23 = vadd.f32 %v42_v21, %v41_v20  ;;  %v141_v25 = vld [vmem:[%s478_s1] sm:$0xff]  ;;  %v143_v27 = vld [vmem:[%s478_s1 + $0x10] sm:$0xff]  ;;  %v144_v30 = vld [vmem:[%s478_s1 + $0x18] sm:$0xff]  ;;  %v93_v40 = vsub.s32 %v90_v36, %v87_v38  ;;  %v100_v43 = vsub.s32 %v97_v37, %v87_v38  ;;  %vm130_vm5 = vcmask 1041409   ;;  %p387_p9 = scmp.lt.s32.totalorder %s309_s8, %s309_s8 }
  0x1a   :  { %68 = vadd.xlane.f32.xlu1 %v67_v10  ;;  %v344_v29 = vpack.c.bf16 %v142_v26, %v141_v25  ;;  %v347_v31 = vpack.c.bf16 %v144_v30, %v143_v27  ;;  %v107_v48 = vsub.s32 %v104_v42, %v87_v38  ;;  %vm145_vm6 = vcmask 261120   ;;  %v220_v5 = vld [vmem:[%s479_s2] sm:$0xff]  ;;  %s382_s2 = scalar_lea.vmem %s309_s8, 32 }
  0x1b   :  { %56 = vadd.xlane.f32.xlu0 %v55_v11  ;;  %v51_v63 = vld [vmem:[#allocation2] sm:$0x3]  ;;  %339 = vmatpush3.msra.mxu1 %v220_v5  ;;  %vm221_vm7 = vcmask 64512   ;;  %p383_p8 = scmp.ne.s32.totalorder %s309_s8, %s382_s2  ;;  %p388_p10 = scmp.lt.s32.totalorder %s382_s2, %s382_s2 }
  0x1c   :  { %345 = vmatpush3.bf16.msra.mxu0 %v344_v29 }
  0x1d   :  { %346 = vmatprep.subr.bf16.mxu0 %v412_v28  ;;  %p389_p11 = por %p388_p10, %p387_p9 }
  0x1e   :  { %71 = vadd.xlane.f32.xlu1 %v70_v16 }
  0x1f   :  { %59 = vadd.xlane.f32.xlu0 %v58_v17  ;;  %p390_p12 = pnand %p389_p11, %p383_p8 }
  0x20   :  { %348 = vmatpush3.bf16.msra.mxu0 %v347_v31 }
  0x22   :  { %74 = vadd.xlane.f32.xlu1 %v73_v22 }
  0x23   :  { %62 = vadd.xlane.f32.xlu0 %v61_v23 }
  0xa3   :  { %v66_v34 = vpop.xlane.xlu1 %65 }
  0xa4   :  { %v54_v35 = vpop.xlane.xlu0 %53  ;;  %v114_v51 = vrot.slane %v66_v34, %v88_v44 }
  0xa5   :  { %v89_v53 = vrot.slane %v54_v35, %v88_v44 }
  0xa7   :  { %v69_v39 = vpop.xlane.xlu1 %68 }
  0xa8   :  { %v57_v41 = vpop.xlane.xlu0 %56  ;;  %v118_v46 = vrot.slane %v69_v39, %v93_v40 }
  0xa9   :  { %v94_v49 = vrot.slane %v57_v41, %v93_v40 }
  0xaa   :  { %v119_v55 = vsel %vm95_vm2, %v118_v46, %v114_v51 }
  0xab   :  { %v72_v45 = vpop.xlane.xlu1 %71  ;;  %v96_v58 = vsel %vm95_vm2, %v94_v49, %v89_v53 }
  0xac   :  { %v60_v47 = vpop.xlane.xlu0 %59  ;;  %v123_v50 = vrot.slane %v72_v45, %v100_v43 }
  0xad   :  { %v101_v52 = vrot.slane %v60_v47, %v100_v43 }
  0xae   :  { %v124_v59 = vsel %vm102_vm3, %v123_v50, %v119_v55 }
  0xaf   :  { %v75_v54 = vpop.xlane.xlu1 %74  ;;  %v103_v61 = vsel %vm102_vm3, %v101_v52, %v96_v58 }
  0xb0   :  { %v128_v56 = vrot.slane %v75_v54, %v107_v48  ;;  %v63_v57 = vpop.xlane.xlu0 %62 }
  0xb1   :  { %v108_v60 = vrot.slane %v63_v57, %v107_v48 }
  0xb2   :  { %v129_v62 = vsel %vm109_vm4, %v128_v56, %v124_v59 }
  0xb3   :  { %v110_v0 = vsel %vm109_vm4, %v108_v60, %v103_v61 }
  0xb4   :  { %v131_v1 = vsel %vm130_vm5, %v129_v62, %v110_v0 }
  0xb5   :  { %v133_v2 = vadd.f32 %v131_v1, %v51_v63 }
  0xb7   :  { %135 = vst.msk [vmem:[#allocation2] sm:$0x3] %vm33_vm0, %v133_v2 }
  0xbe   :  { %v139_v3 = vld [vmem:[#allocation2] sm:$0x3] }
  0xbf   :  { %v140_v4 = vmul.f32 0.00390625, %v139_v3 }
  0xc1   :  { %336 = vmatmul.mubr.msk.f32.vlgmr.msra.gmra.mrb[0].mxu0 %vm145_vm6, %v140_v4 }
 0x194   :  { %v215_v6 = vpop.f32.mrb[0].mxu0 }
 0x195   :  { %v219_v7 = vmax.f32 %v215_v6, 0.0  ;;  %v337_v8 = vpop.f32.mrb[1].mxu0 }
 0x197   :  { %341 = vmatmul.mubr.msk.f32.vlgmr.msra.gmra.mrb[0].mxu1 %vm221_vm7, %v219_v7 }
 0x26a   :  { %v291_v9 = vpop.f32.mrb[0].mxu1 }
 0x26b   :  { %v319_v10 = vmul.f32 -1.442695, %v291_v9  ;;  %v342_v11 = vpop.f32.mrb[1].mxu1 }
 0x26d   :  { %356 = vpow2.f32 %v319_v10 }
 0x277   :  { %v357_v12 = vpop.eup %356 }
 0x278   :  { %v298_v13 = vadd.f32 1.0, %v357_v12 }
 0x27a   :  { %358 = vrcp.f32 %v298_v13 }
 0x284   :  { %v359_v14 = vpop.eup %358 }
 0x285   :  { %301 = vst.msk [vmem:[#allocation6] sm:$0x3] %vm33_vm0, %v359_v14 }
 0x286   :  { %393 = shalt.err (!%p390_p12)
}
 0x287   :  { %s394_s11 = scalar_lea.hbm %s480_s3, 32 }
 0x288   :  { %p395_p13 = scmp.ne.s32.totalorder %s480_s3, %s394_s11  ;;  %p398_p0 = scmp.lt.u32.totalorder %s394_s11, %s480_s3 }
 0x28a   :  { %p400_p1 = pnand %p398_p0, %p395_p13 }
 0x28c   :  { %403 = shalt.err (!%p400_p1)
}
 0x28d   :  { %311 = dma.vmem_to_hbm [thread:$0]  %s309_s8, 32, %s480_s3, [#allocation5]  }
 0x28e   :  { %406 = dma.done.wait [#allocation5], 32  }
 0x28f   :  { %407 = vsyncadd [#allocation5], 4294967264 }
 0x290   :  { %315 = vsyncpa [#allocation4], 1 }
 0x291   :  { %316 = vsyncpa [#allocation5], 1 }

</bundles_post_ra>
